<compile_context>
chip_gen: v7x
topology: tpu7x:2x2x1
jax: 0.10.0
libtpu: 0.0.40
codegen_flags: <defaults>
</compile_context>

<pallas_src>
import functools

import jax
import jax.numpy as jnp
import numpy as np
from jax import lax
from jax.experimental import pallas as pl
from jax.experimental.pallas import tpu as pltpu


def _conv_block_kernel(x_ref, w1_ref, b1_ref, w2_ref, b2_ref, out_ref,
                       xpad_ref, patch_ref, *, H, W, Cin, Cout, bb):
    # x_ref   : (bb, Cin, H*W)      channel-first, flattened spatial (lane-dense)
    # w1_ref  : (Cin, 9*Cin)        conv1 weight slab  [co, (kh*3+kw)*Cin + ci]
    # b1_ref  : (Cin, 1)
    # w2_ref  : (Cout, 9*Cin)       conv2 weight slab
    # b2_ref  : (Cout, 1)
    # out_ref : (bb, Cout, H*W)     "same"-anchored conv2 output (full grid)
    # xpad_ref: (Cin, H*W + 2*(W+1)) f32 zero-halo scratch (flat row-major)
    # patch_ref:(9*Cin, H*W)        f32 im2col slab scratch
    HW = H * W
    P = W + 1                       # halo width on each side of the flat axis

    # Zero the halo scratch once per grid step; only the centre is rewritten.
    xpad_ref[...] = jnp.zeros(xpad_ref.shape, xpad_ref.dtype)

    # Hoist weight / bias loads (and f32 casts) out of the batch loop.
    w1 = w1_ref[...].astype(jnp.float32)            # (Cin,  9*Cin)
    w2 = w2_ref[...].astype(jnp.float32)            # (Cout, 9*Cin)
    b1 = b1_ref[...].astype(jnp.float32)            # (Cin, 1)
    b2 = b2_ref[...].astype(jnp.float32)            # (Cout, 1)

    # Column masks for the horizontally shifted taps (conv1 zero padding).
    col = lax.broadcasted_iota(jnp.int32, (1, HW), 1) % W
    not_first_col = col > 0                         # valid source for dx = -1
    not_last_col = col < (W - 1)                    # valid source for dx = +1

    taps = [(dy, dx) for dy in (-1, 0, 1) for dx in (-1, 0, 1)]

    def build_patch(masked):
        # Pack the 9 shifted views of the haloed activation into a dense
        # (9*Cin, HW) im2col slab -> one MXU matmul per conv.
        for t, (dy, dx) in enumerate(taps):
            s = dy * W + dx
            piece = xpad_ref[:, P + s:P + s + HW]   # (Cin, HW)
            if masked and dx == -1:
                piece = jnp.where(not_first_col, piece, 0.0)
            elif masked and dx == 1:
                piece = jnp.where(not_last_col, piece, 0.0)
            patch_ref[t * Cin:(t + 1) * Cin, :] = piece
        return patch_ref[...]                       # (9*Cin, HW)

    def one_image(b):
        x = x_ref[b].astype(jnp.float32)            # (Cin, HW)
        xpad_ref[:, P:P + HW] = x

        # conv1 (3x3, pad=1) + bias + residual + ReLU, full H*W grid.
        p1 = build_patch(masked=True)
        mid = jnp.dot(w1, p1, preferred_element_type=jnp.float32) + b1 + x
        mid = jnp.maximum(mid, 0.0)                 # (Cin, HW)

        # conv2 (3x3, valid) computed as a "same" conv on the full grid; the
        # wrapper keeps rows/cols [1:H-1, 1:W-1].  Edge-column wrap values
        # only land on discarded positions, so no masks are needed here.
        xpad_ref[:, P:P + HW] = mid
        p2 = build_patch(masked=False)
        out = jnp.dot(w2, p2, preferred_element_type=jnp.float32) + b2
        out_ref[b] = jnp.maximum(out, 0.0).astype(out_ref.dtype)

    if bb == 1:
        one_image(0)
    else:
        def body(b, carry):
            one_image(b)
            return carry
        lax.fori_loop(0, bb, body, 0)


def _batch_block(n):
    # >= 2 grid steps whenever possible (keeps both v7x TensorCores busy)
    # while amortizing per-grid-step overhead for larger batches.
    if n >= 2 and n % 2 == 0:
        return n // 2
    return 1


@jax.jit
def cnn_conv_block(x_nchw, w1_oihw, b1, w2_oihw, b2):
    """Pallas implementation of CNNConvBlock.forward. x_nchw: (N, Cin, H, W)."""
    N, Cin, H, W = x_nchw.shape
    Cout = w2_oihw.shape[0]
    HW = H * W
    HWP = HW + 2 * (W + 1)
    bb = _batch_block(N)

    # Free reshape to the lane-dense channel-first layout (no HBM transpose).
    x_flat = x_nchw.reshape(N, Cin, HW)
    # Weight slabs: OIHW -> (O, kh, kw, I) -> (O, 9*I); matches the kernel's
    # tap ordering (kh-major, then kw, then ci).  Tiny one-off ops.
    w1s = jnp.transpose(w1_oihw, (0, 2, 3, 1)).reshape(Cin, 9 * Cin)
    w2s = jnp.transpose(w2_oihw, (0, 2, 3, 1)).reshape(Cout, 9 * Cin)
    b1c = b1.reshape(Cin, 1)
    b2c = b2.reshape(Cout, 1)

    kernel = functools.partial(_conv_block_kernel, H=H, W=W, Cin=Cin,
                               Cout=Cout, bb=bb)

    flops = 2 * 9 * Cin * (Cin + Cout) * HW * N
    bytes_accessed = (x_flat.size + N * Cout * HW) * x_nchw.dtype.itemsize \
        + (w1s.size + w2s.size + b1c.size + b2c.size) * 4

    out_full = pl.pallas_call(
        kernel,
        out_shape=jax.ShapeDtypeStruct((N, Cout, HW), x_nchw.dtype),
        grid=(N // bb,),
        in_specs=[
            pl.BlockSpec((bb, Cin, HW), lambda n: (n, 0, 0)),
            pl.BlockSpec((Cin, 9 * Cin), lambda n: (0, 0)),
            pl.BlockSpec((Cin, 1), lambda n: (0, 0)),
            pl.BlockSpec((Cout, 9 * Cin), lambda n: (0, 0)),
            pl.BlockSpec((Cout, 1), lambda n: (0, 0)),
        ],
        out_specs=pl.BlockSpec((bb, Cout, HW), lambda n: (n, 0, 0)),
        scratch_shapes=[pltpu.VMEM((Cin, HWP), jnp.float32),
                        pltpu.VMEM((9 * Cin, HW), jnp.float32)],
        compiler_params=pltpu.CompilerParams(
            dimension_semantics=("parallel",)),
        cost_estimate=pl.CostEstimate(flops=flops, transcendentals=0,
                                      bytes_accessed=bytes_accessed),
    )(x_flat, w1s, b1c, w2s, b2c)

    # "Same"-anchored conv2 grid -> valid (padding=0) region is [1:H-1, 1:W-1].
    # Output is already NCHW; the reshape is free, the slice is tiny.
    return out_full.reshape(N, Cout, H, W)[:, :, 1:H - 1, 1:W - 1]


def reference(x_nchw, w1_oihw, b1, w2_oihw, b2):
    """Pure-JAX reference matching the PyTorch forward."""
    dn = ("NCHW", "OIHW", "NCHW")
    out = lax.conv_general_dilated(x_nchw, w1_oihw, (1, 1),
                                   ((1, 1), (1, 1)), dimension_numbers=dn)
    out = out + b1[None, :, None, None] + x_nchw
    out = jnp.maximum(out, 0.0)
    out = lax.conv_general_dilated(out, w2_oihw, (1, 1), "VALID",
                                   dimension_numbers=dn)
    return jnp.maximum(out + b2[None, :, None, None], 0.0)


if __name__ == "__main__":
    N, Cin, Cout, H, W = 2, 4, 8, 16, 16

    key = jax.random.PRNGKey(0)
    k1, k2, k3, k4, k5 = jax.random.split(key, 5)
    x = jax.random.normal(k1, (N, Cin, H, W), jnp.float32)
    # Deterministic parameter init (shapes from nn.Conv2d in __init__).
    w1 = 0.1 * jax.random.normal(k2, (Cin, Cin, 3, 3), jnp.float32)   # conv1.weight
    b1 = 0.1 * jax.random.normal(k3, (Cin,), jnp.float32)             # conv1.bias
    w2 = 0.1 * jax.random.normal(k4, (Cout, Cin, 3, 3), jnp.float32)  # conv2.weight
    b2 = 0.1 * jax.random.normal(k5, (Cout,), jnp.float32)            # conv2.bias

    out = cnn_conv_block(x, w1, b1, w2, b2)
    jax.block_until_ready(out)

    ref = reference(x, w1, b1, w2, b2)
    assert out.shape == (N, Cout, H - 2, W - 2), out.shape
    np.testing.assert_allclose(np.asarray(out), np.asarray(ref),
                               rtol=1e-4, atol=1e-4)
    print("KERNEL_OK")
</pallas_src>

<mosaic_0001>
module attributes {stable_mosaic.version = 11 : i64} {
  func.func @_conv_block_kernel(%arg0: i32, %arg1: memref<1x4x256xf32, #tpu.memory_space<vmem>>, %arg2: memref<4x36xf32, #tpu.memory_space<vmem>>, %arg3: memref<4x1xf32, #tpu.memory_space<vmem>>, %arg4: memref<8x36xf32, #tpu.memory_space<vmem>>, %arg5: memref<8x1xf32, #tpu.memory_space<vmem>>, %arg6: memref<1x8x256xf32, #tpu.memory_space<vmem>>, %arg7: memref<4x290xf32, #tpu.memory_space<vmem>>, %arg8: memref<36x256xf32, #tpu.memory_space<vmem>>) attributes {dimension_semantics = [#tpu.dimension_semantics<parallel>], iteration_bounds = array<i64: 2>, scalar_prefetch = 0 : i64, scratch_operands = 2 : i64, tpu.core_type = #tpu.core_type<tc>, window_params = [{transform_indices = @transform_0, window_bounds = array<i64: 1, 4, 256>}, {pipeline_mode = #tpu.pipeline_mode<synchronous>, transform_indices = @transform_1, window_bounds = array<i64: 4, 36>}, {pipeline_mode = #tpu.pipeline_mode<synchronous>, transform_indices = @transform_2, window_bounds = array<i64: 4, 1>}, {pipeline_mode = #tpu.pipeline_mode<synchronous>, transform_indices = @transform_3, window_bounds = array<i64: 8, 36>}, {pipeline_mode = #tpu.pipeline_mode<synchronous>, transform_indices = @transform_4, window_bounds = array<i64: 8, 1>}, {transform_indices = @transform_5, window_bounds = array<i64: 1, 8, 256>}]} {
    %cst = arith.constant 0.000000e+00 : f32
    %0 = vector.broadcast %cst : f32 to vector<4x290xf32>
    %c0 = arith.constant 0 : index
    %c0_0 = arith.constant 0 : index
    %1 = vector.load %arg7[%c0, %c0_0] : memref<4x290xf32, #tpu.memory_space<vmem>>, vector<4x290xf32>
    tpu.vector_store %arg7[%c0, %c0_0], %0 {strides = array<i32>} : memref<4x290xf32, #tpu.memory_space<vmem>>, vector<4x290xf32>,
    %c0_1 = arith.constant 0 : index
    %c0_2 = arith.constant 0 : index
    %2 = vector.load %arg2[%c0_1, %c0_2] : memref<4x36xf32, #tpu.memory_space<vmem>>, vector<4x36xf32>
    %c0_3 = arith.constant 0 : index
    %c0_4 = arith.constant 0 : index
    %3 = vector.load %arg4[%c0_3, %c0_4] : memref<8x36xf32, #tpu.memory_space<vmem>>, vector<8x36xf32>
    %c0_5 = arith.constant 0 : index
    %c0_6 = arith.constant 0 : index
    %4 = vector.load %arg3[%c0_5, %c0_6] : memref<4x1xf32, #tpu.memory_space<vmem>>, vector<4x1xf32>
    %c0_7 = arith.constant 0 : index
    %c0_8 = arith.constant 0 : index
    %5 = vector.load %arg5[%c0_7, %c0_8] : memref<8x1xf32, #tpu.memory_space<vmem>>, vector<8x1xf32>
    %6 = tpu.iota {dimensions = array<i32: 1>} : vector<1x256xi32>
    %c16_i32 = arith.constant 16 : i32
    %c0_i32 = arith.constant 0 : i32
    %7 = arith.cmpi eq, %c16_i32, %c0_i32 : i32
    %c1_i32 = arith.constant 1 : i32
    %8 = arith.select %7, %c1_i32, %c16_i32 : i32
    %9 = vector.broadcast %8 : i32 to vector<1x256xi32>
    %10 = arith.remsi %6, %9 : vector<1x256xi32>
    %c0_i32_9 = arith.constant 0 : i32
    %11 = vector.broadcast %c0_i32_9 : i32 to vector<1x256xi32>
    %12 = arith.cmpi ne, %10, %11 : vector<1x256xi32>
    %c0_i32_10 = arith.constant 0 : i32
    %13 = vector.broadcast %c0_i32_10 : i32 to vector<1x256xi32>
    %14 = arith.cmpi slt, %10, %13 : vector<1x256xi32>
    %c0_i32_11 = arith.constant 0 : i32
    %15 = arith.cmpi slt, %8, %c0_i32_11 : i32
    %16 = vector.broadcast %15 : i1 to vector<1x256xi1>
    %17 = vector.broadcast %16 : vector<1x256xi1> to vector<1x256xi1>
    %18 = arith.xori %14, %17 : vector<1x256xi1>
    %19 = arith.andi %18, %12 : vector<1x256xi1>
    %20 = vector.broadcast %8 : i32 to vector<1x256xi32>
    %21 = arith.addi %10, %20 : vector<1x256xi32>
    %22 = arith.select %19, %21, %10 : vector<1x256xi1>, vector<1x256xi32>
    %c0_i32_12 = arith.constant 0 : i32
    %23 = vector.broadcast %c0_i32_12 : i32 to vector<1x256xi32>
    %24 = arith.cmpi sgt, %22, %23 : vector<1x256xi32>
    %c15_i32 = arith.constant 15 : i32
    %25 = vector.broadcast %c15_i32 : i32 to vector<1x256xi32>
    %26 = arith.cmpi slt, %22, %25 : vector<1x256xi32>
    %c0_13 = arith.constant 0 : index
    %c0_14 = arith.constant 0 : index
    %c0_15 = arith.constant 0 : index
    %27 = vector.load %arg1[%c0_13, %c0_14, %c0_15] : memref<1x4x256xf32, #tpu.memory_space<vmem>>, vector<1x4x256xf32>
    %28 = vector.shape_cast %27 : vector<1x4x256xf32> to vector<4x256xf32>
    %c0_16 = arith.constant 0 : index
    %c17 = arith.constant 17 : index
    %29 = vector.load %arg7[%c0_16, %c17] : memref<4x290xf32, #tpu.memory_space<vmem>>, vector<4x256xf32>
    tpu.vector_store %arg7[%c0_16, %c17], %28 {strides = array<i32>} : memref<4x290xf32, #tpu.memory_space<vmem>>, vector<4x256xf32>,
    %c0_17 = arith.constant 0 : index
    %c0_18 = arith.constant 0 : index
    %30 = vector.load %arg7[%c0_17, %c0_18] : memref<4x290xf32, #tpu.memory_space<vmem>>, vector<4x256xf32>
    %cst_19 = arith.constant 0.000000e+00 : f32
    %31 = vector.shape_cast %24 : vector<1x256xi1> to vector<1x256xi1>
    %32 = vector.broadcast %31 : vector<1x256xi1> to vector<4x256xi1>
    %33 = vector.broadcast %cst_19 : f32 to vector<4x256xf32>
    %34 = arith.select %32, %30, %33 : vector<4x256xi1>, vector<4x256xf32>
    %c0_20 = arith.constant 0 : index
    %c0_21 = arith.constant 0 : index
    %35 = vector.load %arg8[%c0_20, %c0_21] : memref<36x256xf32, #tpu.memory_space<vmem>>, vector<4x256xf32>
    tpu.vector_store %arg8[%c0_20, %c0_21], %34 {strides = array<i32>} : memref<36x256xf32, #tpu.memory_space<vmem>>, vector<4x256xf32>,
    %c0_22 = arith.constant 0 : index
    %c1 = arith.constant 1 : index
    %36 = vector.load %arg7[%c0_22, %c1] : memref<4x290xf32, #tpu.memory_space<vmem>>, vector<4x256xf32>
    %c4 = arith.constant 4 : index
    %c0_23 = arith.constant 0 : index
    %37 = vector.load %arg8[%c4, %c0_23] : memref<36x256xf32, #tpu.memory_space<vmem>>, vector<4x256xf32>
    tpu.vector_store %arg8[%c4, %c0_23], %36 {strides = array<i32>} : memref<36x256xf32, #tpu.memory_space<vmem>>, vector<4x256xf32>,
    %c0_24 = arith.constant 0 : index
    %c2 = arith.constant 2 : index
    %38 = vector.load %arg7[%c0_24, %c2] : memref<4x290xf32, #tpu.memory_space<vmem>>, vector<4x256xf32>
    %cst_25 = arith.constant 0.000000e+00 : f32
    %39 = vector.shape_cast %26 : vector<1x256xi1> to vector<1x256xi1>
    %40 = vector.broadcast %39 : vector<1x256xi1> to vector<4x256xi1>
    %41 = vector.broadcast %cst_25 : f32 to vector<4x256xf32>
    %42 = arith.select %40, %38, %41 : vector<4x256xi1>, vector<4x256xf32>
    %c8 = arith.constant 8 : index
    %c0_26 = arith.constant 0 : index
    %43 = vector.load %arg8[%c8, %c0_26] : memref<36x256xf32, #tpu.memory_space<vmem>>, vector<4x256xf32>
    tpu.vector_store %arg8[%c8, %c0_26], %42 {strides = array<i32>} : memref<36x256xf32, #tpu.memory_space<vmem>>, vector<4x256xf32>,
    %c0_27 = arith.constant 0 : index
    %c16 = arith.constant 16 : index
    %44 = vector.load %arg7[%c0_27, %c16] : memref<4x290xf32, #tpu.memory_space<vmem>>, vector<4x256xf32>
    %cst_28 = arith.constant 0.000000e+00 : f32
    %45 = vector.shape_cast %24 : vector<1x256xi1> to vector<1x256xi1>
    %46 = vector.broadcast %45 : vector<1x256xi1> to vector<4x256xi1>
    %47 = vector.broadcast %cst_28 : f32 to vector<4x256xf32>
    %48 = arith.select %46, %44, %47 : vector<4x256xi1>, vector<4x256xf32>
    %c12 = arith.constant 12 : index
    %c0_29 = arith.constant 0 : index
    %49 = vector.load %arg8[%c12, %c0_29] : memref<36x256xf32, #tpu.memory_space<vmem>>, vector<4x256xf32>
    tpu.vector_store %arg8[%c12, %c0_29], %48 {strides = array<i32>} : memref<36x256xf32, #tpu.memory_space<vmem>>, vector<4x256xf32>,
    %c0_30 = arith.constant 0 : index
    %c17_31 = arith.constant 17 : index
    %50 = vector.load %arg7[%c0_30, %c17_31] : memref<4x290xf32, #tpu.memory_space<vmem>>, vector<4x256xf32>
    %c16_32 = arith.constant 16 : index
    %c0_33 = arith.constant 0 : index
    %51 = vector.load %arg8[%c16_32, %c0_33] : memref<36x256xf32, #tpu.memory_space<vmem>>, vector<4x256xf32>
    tpu.vector_store %arg8[%c16_32, %c0_33], %50 {strides = array<i32>} : memref<36x256xf32, #tpu.memory_space<vmem>>, vector<4x256xf32>,
    %c0_34 = arith.constant 0 : index
    %c18 = arith.constant 18 : index
    %52 = vector.load %arg7[%c0_34, %c18] : memref<4x290xf32, #tpu.memory_space<vmem>>, vector<4x256xf32>
    %cst_35 = arith.constant 0.000000e+00 : f32
    %53 = vector.shape_cast %26 : vector<1x256xi1> to vector<1x256xi1>
    %54 = vector.broadcast %53 : vector<1x256xi1> to vector<4x256xi1>
    %55 = vector.broadcast %cst_35 : f32 to vector<4x256xf32>
    %56 = arith.select %54, %52, %55 : vector<4x256xi1>, vector<4x256xf32>
    %c20 = arith.constant 20 : index
    %c0_36 = arith.constant 0 : index
    %57 = vector.load %arg8[%c20, %c0_36] : memref<36x256xf32, #tpu.memory_space<vmem>>, vector<4x256xf32>
    tpu.vector_store %arg8[%c20, %c0_36], %56 {strides = array<i32>} : memref<36x256xf32, #tpu.memory_space<vmem>>, vector<4x256xf32>,
    %c0_37 = arith.constant 0 : index
    %c32 = arith.constant 32 : index
    %58 = vector.load %arg7[%c0_37, %c32] : memref<4x290xf32, #tpu.memory_space<vmem>>, vector<4x256xf32>
    %cst_38 = arith.constant 0.000000e+00 : f32
    %59 = vector.shape_cast %24 : vector<1x256xi1> to vector<1x256xi1>
    %60 = vector.broadcast %59 : vector<1x256xi1> to vector<4x256xi1>
    %61 = vector.broadcast %cst_38 : f32 to vector<4x256xf32>
    %62 = arith.select %60, %58, %61 : vector<4x256xi1>, vector<4x256xf32>
    %c24 = arith.constant 24 : index
    %c0_39 = arith.constant 0 : index
    %63 = vector.load %arg8[%c24, %c0_39] : memref<36x256xf32, #tpu.memory_space<vmem>>, vector<4x256xf32>
    tpu.vector_store %arg8[%c24, %c0_39], %62 {strides = array<i32>} : memref<36x256xf32, #tpu.memory_space<vmem>>, vector<4x256xf32>,
    %c0_40 = arith.constant 0 : index
    %c33 = arith.constant 33 : index
    %64 = vector.load %arg7[%c0_40, %c33] : memref<4x290xf32, #tpu.memory_space<vmem>>, vector<4x256xf32>
    %c28 = arith.constant 28 : index
    %c0_41 = arith.constant 0 : index
    %65 = vector.load %arg8[%c28, %c0_41] : memref<36x256xf32, #tpu.memory_space<vmem>>, vector<4x256xf32>
    tpu.vector_store %arg8[%c28, %c0_41], %64 {strides = array<i32>} : memref<36x256xf32, #tpu.memory_space<vmem>>, vector<4x256xf32>,
    %c0_42 = arith.constant 0 : index
    %c34 = arith.constant 34 : index
    %66 = vector.load %arg7[%c0_42, %c34] : memref<4x290xf32, #tpu.memory_space<vmem>>, vector<4x256xf32>
    %cst_43 = arith.constant 0.000000e+00 : f32
    %67 = vector.shape_cast %26 : vector<1x256xi1> to vector<1x256xi1>
    %68 = vector.broadcast %67 : vector<1x256xi1> to vector<4x256xi1>
    %69 = vector.broadcast %cst_43 : f32 to vector<4x256xf32>
    %70 = arith.select %68, %66, %69 : vector<4x256xi1>, vector<4x256xf32>
    %c32_44 = arith.constant 32 : index
    %c0_45 = arith.constant 0 : index
    %71 = vector.load %arg8[%c32_44, %c0_45] : memref<36x256xf32, #tpu.memory_space<vmem>>, vector<4x256xf32>
    tpu.vector_store %arg8[%c32_44, %c0_45], %70 {strides = array<i32>} : memref<36x256xf32, #tpu.memory_space<vmem>>, vector<4x256xf32>,
    %c0_46 = arith.constant 0 : index
    %c0_47 = arith.constant 0 : index
    %72 = vector.load %arg8[%c0_46, %c0_47] : memref<36x256xf32, #tpu.memory_space<vmem>>, vector<36x256xf32>
    %cst_48 = arith.constant dense<0.000000e+00> : vector<4x256xf32>
    %73 = tpu.matmul %2, %72, %cst_48 {dimension_numbers = #tpu.dot_dimension_numbers<[1], [0], [0], [1], [0, 0, 1, 1], [], []>} : vector<4x36xf32>, vector<36x256xf32>, vector<4x256xf32> -> vector<4x256xf32>
    %74 = vector.broadcast %4 : vector<4x1xf32> to vector<4x256xf32>
    %75 = arith.addf %73, %74 : vector<4x256xf32>
    %76 = arith.addf %75, %28 : vector<4x256xf32>
    %cst_49 = arith.constant 0.000000e+00 : f32
    %77 = vector.broadcast %cst_49 : f32 to vector<4x256xf32>
    %78 = arith.maximumf %76, %77 : vector<4x256xf32>
    %c0_50 = arith.constant 0 : index
    %c17_51 = arith.constant 17 : index
    %79 = vector.load %arg7[%c0_50, %c17_51] : memref<4x290xf32, #tpu.memory_space<vmem>>, vector<4x256xf32>
    tpu.vector_store %arg7[%c0_50, %c17_51], %78 {strides = array<i32>} : memref<4x290xf32, #tpu.memory_space<vmem>>, vector<4x256xf32>,
    %c0_52 = arith.constant 0 : index
    %c0_53 = arith.constant 0 : index
    %80 = vector.load %arg7[%c0_52, %c0_53] : memref<4x290xf32, #tpu.memory_space<vmem>>, vector<4x256xf32>
    %c0_54 = arith.constant 0 : index
    %c0_55 = arith.constant 0 : index
    %81 = vector.load %arg8[%c0_54, %c0_55] : memref<36x256xf32, #tpu.memory_space<vmem>>, vector<4x256xf32>
    tpu.vector_store %arg8[%c0_54, %c0_55], %80 {strides = array<i32>} : memref<36x256xf32, #tpu.memory_space<vmem>>, vector<4x256xf32>,
    %c0_56 = arith.constant 0 : index
    %c1_57 = arith.constant 1 : index
    %82 = vector.load %arg7[%c0_56, %c1_57] : memref<4x290xf32, #tpu.memory_space<vmem>>, vector<4x256xf32>
    %c4_58 = arith.constant 4 : index
    %c0_59 = arith.constant 0 : index
    %83 = vector.load %arg8[%c4_58, %c0_59] : memref<36x256xf32, #tpu.memory_space<vmem>>, vector<4x256xf32>
    tpu.vector_store %arg8[%c4_58, %c0_59], %82 {strides = array<i32>} : memref<36x256xf32, #tpu.memory_space<vmem>>, vector<4x256xf32>,
    %c0_60 = arith.constant 0 : index
    %c2_61 = arith.constant 2 : index
    %84 = vector.load %arg7[%c0_60, %c2_61] : memref<4x290xf32, #tpu.memory_space<vmem>>, vector<4x256xf32>
    %c8_62 = arith.constant 8 : index
    %c0_63 = arith.constant 0 : index
    %85 = vector.load %arg8[%c8_62, %c0_63] : memref<36x256xf32, #tpu.memory_space<vmem>>, vector<4x256xf32>
    tpu.vector_store %arg8[%c8_62, %c0_63], %84 {strides = array<i32>} : memref<36x256xf32, #tpu.memory_space<vmem>>, vector<4x256xf32>,
    %c0_64 = arith.constant 0 : index
    %c16_65 = arith.constant 16 : index
    %86 = vector.load %arg7[%c0_64, %c16_65] : memref<4x290xf32, #tpu.memory_space<vmem>>, vector<4x256xf32>
    %c12_66 = arith.constant 12 : index
    %c0_67 = arith.constant 0 : index
    %87 = vector.load %arg8[%c12_66, %c0_67] : memref<36x256xf32, #tpu.memory_space<vmem>>, vector<4x256xf32>
    tpu.vector_store %arg8[%c12_66, %c0_67], %86 {strides = array<i32>} : memref<36x256xf32, #tpu.memory_space<vmem>>, vector<4x256xf32>,
    %c0_68 = arith.constant 0 : index
    %c17_69 = arith.constant 17 : index
    %88 = vector.load %arg7[%c0_68, %c17_69] : memref<4x290xf32, #tpu.memory_space<vmem>>, vector<4x256xf32>
    %c16_70 = arith.constant 16 : index
    %c0_71 = arith.constant 0 : index
    %89 = vector.load %arg8[%c16_70, %c0_71] : memref<36x256xf32, #tpu.memory_space<vmem>>, vector<4x256xf32>
    tpu.vector_store %arg8[%c16_70, %c0_71], %88 {strides = array<i32>} : memref<36x256xf32, #tpu.memory_space<vmem>>, vector<4x256xf32>,
    %c0_72 = arith.constant 0 : index
    %c18_73 = arith.constant 18 : index
    %90 = vector.load %arg7[%c0_72, %c18_73] : memref<4x290xf32, #tpu.memory_space<vmem>>, vector<4x256xf32>
    %c20_74 = arith.constant 20 : index
    %c0_75 = arith.constant 0 : index
    %91 = vector.load %arg8[%c20_74, %c0_75] : memref<36x256xf32, #tpu.memory_space<vmem>>, vector<4x256xf32>
    tpu.vector_store %arg8[%c20_74, %c0_75], %90 {strides = array<i32>} : memref<36x256xf32, #tpu.memory_space<vmem>>, vector<4x256xf32>,
    %c0_76 = arith.constant 0 : index
    %c32_77 = arith.constant 32 : index
    %92 = vector.load %arg7[%c0_76, %c32_77] : memref<4x290xf32, #tpu.memory_space<vmem>>, vector<4x256xf32>
    %c24_78 = arith.constant 24 : index
    %c0_79 = arith.constant 0 : index
    %93 = vector.load %arg8[%c24_78, %c0_79] : memref<36x256xf32, #tpu.memory_space<vmem>>, vector<4x256xf32>
    tpu.vector_store %arg8[%c24_78, %c0_79], %92 {strides = array<i32>} : memref<36x256xf32, #tpu.memory_space<vmem>>, vector<4x256xf32>,
    %c0_80 = arith.constant 0 : index
    %c33_81 = arith.constant 33 : index
    %94 = vector.load %arg7[%c0_80, %c33_81] : memref<4x290xf32, #tpu.memory_space<vmem>>, vector<4x256xf32>
    %c28_82 = arith.constant 28 : index
    %c0_83 = arith.constant 0 : index
    %95 = vector.load %arg8[%c28_82, %c0_83] : memref<36x256xf32, #tpu.memory_space<vmem>>, vector<4x256xf32>
    tpu.vector_store %arg8[%c28_82, %c0_83], %94 {strides = array<i32>} : memref<36x256xf32, #tpu.memory_space<vmem>>, vector<4x256xf32>,
    %c0_84 = arith.constant 0 : index
    %c34_85 = arith.constant 34 : index
    %96 = vector.load %arg7[%c0_84, %c34_85] : memref<4x290xf32, #tpu.memory_space<vmem>>, vector<4x256xf32>
    %c32_86 = arith.constant 32 : index
    %c0_87 = arith.constant 0 : index
    %97 = vector.load %arg8[%c32_86, %c0_87] : memref<36x256xf32, #tpu.memory_space<vmem>>, vector<4x256xf32>
    tpu.vector_store %arg8[%c32_86, %c0_87], %96 {strides = array<i32>} : memref<36x256xf32, #tpu.memory_space<vmem>>, vector<4x256xf32>,
    %c0_88 = arith.constant 0 : index
    %c0_89 = arith.constant 0 : index
    %98 = vector.load %arg8[%c0_88, %c0_89] : memref<36x256xf32, #tpu.memory_space<vmem>>, vector<36x256xf32>
    %cst_90 = arith.constant dense<0.000000e+00> : vector<8x256xf32>
    %99 = tpu.matmul %3, %98, %cst_90 {dimension_numbers = #tpu.dot_dimension_numbers<[1], [0], [0], [1], [0, 0, 1, 1], [], []>} : vector<8x36xf32>, vector<36x256xf32>, vector<8x256xf32> -> vector<8x256xf32>
    %100 = vector.broadcast %5 : vector<8x1xf32> to vector<8x256xf32>
    %101 = arith.addf %99, %100 : vector<8x256xf32>
    %cst_91 = arith.constant 0.000000e+00 : f32
    %102 = vector.broadcast %cst_91 : f32 to vector<8x256xf32>
    %103 = arith.maximumf %101, %102 : vector<8x256xf32>
    %c0_92 = arith.constant 0 : index
    %c0_93 = arith.constant 0 : index
    %c0_94 = arith.constant 0 : index
    %104 = vector.load %arg6[%c0_92, %c0_93, %c0_94] : memref<1x8x256xf32, #tpu.memory_space<vmem>>, vector<1x8x256xf32>
    %105 = vector.shape_cast %104 : vector<1x8x256xf32> to vector<8x256xf32>
    %106 = vector.shape_cast %103 : vector<8x256xf32> to vector<1x8x256xf32>
    tpu.vector_store %arg6[%c0_92, %c0_93, %c0_94], %106 {strides = array<i32>} : memref<1x8x256xf32, #tpu.memory_space<vmem>>, vector<1x8x256xf32>,
    return
  }
  func.func @transform_0(%arg0: i32) -> (i32, i32, i32) {
    %c0_i32 = arith.constant 0 : i32
    %c0_i32_0 = arith.constant 0 : i32
    %c0_i32_1 = arith.constant 0 : i32
    return %arg0, %c0_i32, %c0_i32_0 : i32, i32, i32
  }
  func.func @transform_1(%arg0: i32) -> (i32, i32) {
    %c0_i32 = arith.constant 0 : i32
    %c0_i32_0 = arith.constant 0 : i32
    %c0_i32_1 = arith.constant 0 : i32
    return %c0_i32, %c0_i32_0 : i32, i32
  }
  func.func @transform_2(%arg0: i32) -> (i32, i32) {
    %c0_i32 = arith.constant 0 : i32
    %c0_i32_0 = arith.constant 0 : i32
    %c0_i32_1 = arith.constant 0 : i32
    return %c0_i32, %c0_i32_0 : i32, i32
  }
  func.func @transform_3(%arg0: i32) -> (i32, i32) {
    %c0_i32 = arith.constant 0 : i32
    %c0_i32_0 = arith.constant 0 : i32
    %c0_i32_1 = arith.constant 0 : i32
    return %c0_i32, %c0_i32_0 : i32, i32
  }
  func.func @transform_4(%arg0: i32) -> (i32, i32) {
    %c0_i32 = arith.constant 0 : i32
    %c0_i32_0 = arith.constant 0 : i32
    %c0_i32_1 = arith.constant 0 : i32
    return %c0_i32, %c0_i32_0 : i32, i32
  }
  func.func @transform_5(%arg0: i32) -> (i32, i32, i32) {
    %c0_i32 = arith.constant 0 : i32
    %c0_i32_0 = arith.constant 0 : i32
    %c0_i32_1 = arith.constant 0 : i32
    return %arg0, %c0_i32, %c0_i32_0 : i32, i32, i32
  }
}

</mosaic_0001>

<bundles_post_ra>
// kernel: cnn_conv_block.1
= control target key start
LH: loop header
LB: loop body
LE: loop exit
PB: predicated region body
PF: predicated region fallthrough
CT: control target
= control target key end

     0   :  { %s992_s18 = smov 0   ;;  %s1193_s0 = inlined_call_operand.vmem [shape: f32[2,4,256], index: 0, kind: input, shape index: {}]   ;;  %s1194_s1 = inlined_call_operand.vmem [shape: f32[4,36], index: 1, kind: input, shape index: {}]   ;;  %s1195_s2 = inlined_call_operand.vmem [shape: f32[4,1], index: 2, kind: input, shape index: {}]   ;;  %s1196_s3 = inlined_call_operand.vmem [shape: f32[8,36], index: 3, kind: input, shape index: {}]   ;;  %s1197_s4 = inlined_call_operand.vmem [shape: f32[8,1], index: 4, kind: input, shape index: {}]   ;;  %s1198_s5 = inlined_call_operand.vmem [shape: f32[2,8,256], index: 5, kind: output, shape index: {}]  }
   0x1 LB: > { %s876_s19 = sadd.s32 4294967295, %s949_s18   ;;  %p880_p0 = scmp.ge.s32.totalorder %s949_s18, 1  ;;  %s949_s18 = sphi %s992_s18, %s15_s18  }
   0x2   : > { %p187_p1 = scmp.lt.s32.totalorder %s949_s18, 3 }
   0x4   : > { %p188_p2 = pnand %p880_p0, %p187_p1 }
   0x5   : > { %p215_p3 = scmp.lt.s32.totalorder (!%p188_p2), %s876_s19, 1  ;;  %vm226_vm0 = vcmask (!%p188_p2), 273408   ;;  %v951_v0 = vmov (!%p188_p2), 0.0   ;;  %s952_s24 = smov (!%p188_p2), 17   ;;  %v232_v2 = vlaneseq (!%p188_p2)  ;;  %vm272_vm1 = vcmask (!%p188_p2), 1043592  }
   0x6   : > { %191 = sbr.rel (%p188_p2) target bundleno = 1049 (0x419), region = 40  ;;  %225 = vst [vmem:[#allocation2] sm:$0xff] (!%p188_p2), %v951_v0  ;;  %227 = vst.msk [vmem:[#allocation2 + $0x8] sm:$0xf] (!%p188_p2), %vm226_vm0, %v951_v0  ;;  %552 = vmatprep.mubr.f32.mxu0 (!%p188_p2), %v951_v0  ;;  %810 = vmatprep.mubr.f32.mxu1 (!%p188_p2), %v951_v0  ;;  %vm273_vm2 = vcmask (!%p188_p2), 1047556   ;;  %vm268_vm3 = vcmask (!%p188_p2), 138240  }
   0x7   : > { %v1010_v3 = vand.u32 (!%p188_p2), 127, %v232_v2  ;;  %vm276_vm4 = vcmask (!%p188_p2), 134144   ;;  %vm1012_vm5 = vmor (!%p188_p2), %vm273_vm2, %vm272_vm1  ;;  %s953_s25 = smov (!%p188_p2), 96   ;;  %s954_s26 = smov (!%p188_p2), 112   ;;  %v961_v26 = vmov (!%p188_p2), 0   ;;  %vm302_vm8 = vcmask (!%p188_p2), 1039360  }
   0x8   : > { %s955_s27 = smov (!%p188_p2), 111   ;;  %s956_s28 = smov (!%p188_p2), 126   ;;  %930 = vset.pattern.permute.xlu1 (!%p188_p2), %v961_v26  ;;  %v230_v27 = vld [vmem:[%s1195_s2] sm:$0xf] (!%p188_p2)  ;;  %931 = vset.pattern.permute.xlu0 (!%p188_p2), %v961_v26  ;;  %vm435_vm9 = vcmask (!%p188_p2), 777216   ;;  %vm344_vm10 = vcmask (!%p188_p2), 916480  }
   0x9   : > { %v1019_v8 = vadd.s32 (!%p188_p2), 128, %v1010_v3  ;;  %v239_v9 = vand.u32 (!%p188_p2), 15, %v1010_v3  ;;  %s957_s29 = smov (!%p188_p2), 110   ;;  %s958_s30 = smov (!%p188_p2), 127   ;;  %vm324_vm11 = vcmask (!%p188_p2), 1031168   ;;  %vm388_vm14 = vcmask (!%p188_p2), 900096  }
   0xa   : > { %s959_s6 = smov (!%p188_p2), 95   ;;  %s960_s7 = smov (!%p188_p2), 94   ;;  %vm414_vm15 = vcmask (!%p188_p2), 785408   ;;  %vm370_vm0 = vcmask (!%p188_p2), 908288   ;;  %vm453_vm1 = vcmask (!%p188_p2), 769024   ;;  %vm481_vm2 = vcmask (!%p188_p2), 1043456  }
   0xb   : > { %v246_v10 = vand.u32 (!%p188_p2), 15, %v1019_v8  ;;  %vm1027_vm6 = vcmp.gt.s32.totalorder (!%p188_p2), %v239_v9, 0  ;;  %vm1083_vm12 = vcmp.lt.s32.totalorder (!%p188_p2), %v239_v9, 15 }
   0xd   : > { %s1210_s19 = smov (!%p215_p3, %s876_s19), 1  ;;  %vm1035_vm7 = vcmp.gt.s32.totalorder %v246_v10, 0  ;;  %vm1089_vm13 = vcmp.lt.s32.totalorder %v246_v10, 15 }
   0xe   : > { %s893_s20 = sshll.u32 %s1210_s19, 3  ;;  %s894_s16 = sshll.u32 %s1210_s19, 4 }
   0xf   : > { %s219_s23 = scalar_lea.vmem %s1193_s0, %s893_s20  ;;  %s224_s21 = scalar_lea.vmem %s1198_s5, %s894_s16 }
  0x10   : > { %v1006_v1 = vld [vmem:[%s219_s23] sm:$0xff] }
  0x11   : > { %265 = vrot.lane.b32.xlu0 %v1006_v1, %s952_s24 }
  0x83   : > { %v266_v4 = vpop.permute.xlu0 %265 }
  0x84   : > { %v267_v6 = vrot.slane %v266_v4, 4 }
  0x86   : > { %v269_v7 = vsel %vm268_vm3, %v267_v6, %v266_v4  ;;  %277 = vst.msk [vmem:[#allocation2 + $0x8] sm:$0xf] %vm276_vm4, %v267_v6 }
  0x87   : > { %275 = vst.msk [vmem:[#allocation2] sm:$0xff] %vm1012_vm5, %v269_v7 }
  0x8d   : > { %v404_v11 = vld [vmem:[#allocation2 + $0x8] sm:$0xf] }
  0x8e   : > { %v334_v12 = vld [vmem:[#allocation2 + $0x8] sm:$0xf]  ;;  %412 = vrot.lane.b32.xlu0 %v404_v11, %s953_s25  ;;  %v290_v14 = vld [vmem:[#allocation2] sm:$0xff] }
  0x8f   : > { %342 = vrot.lane.b32.xlu1 %v334_v12, %s954_s26  ;;  %v337_v16 = vcombine.high %v290_v14, %v290_v14  ;;  %v286_v17 = vsel %vm1027_vm6, %v290_v14, 0.0  ;;  %v360_v18 = vld [vmem:[#allocation2 + $0x8] sm:$0xf]  ;;  %v294_v24 = vcombine.low %v290_v14, %v290_v14 }
  0x90   : > { %v310_v19 = vld [vmem:[#allocation2 + $0x8] sm:$0xf]  ;;  %288 = vst [vmem:[#allocation3] sm:$0xf] %v286_v17 }
  0x91   : > { %v287_v20 = vsel %vm1035_vm7, %v337_v16, 0.0  ;;  %v378_v21 = vld [vmem:[#allocation2 + $0x8] sm:$0xf] }
  0x92   : > { %368 = vrot.lane.b32.xlu0 %v360_v18, %s955_s27  ;;  %289 = vst [vmem:[#allocation3 + $0x8] sm:$0xf] %v287_v20  ;;  %v933_v22 = vld [vmem:[#allocation2 + $0x8] ss:$0 sps:$4 sm:$0xff]  }
  0x93   : > { %322 = vrot.lane.b32.xlu1 %v310_v19, %s956_s28  ;;  %v934_v23 = vld [vmem:[#allocation2 + $0x8] ss:$0 sps:$4 sm:$0xff]  }
  0x94   : > { %v443_v25 = vld [vmem:[#allocation2 + $0x8] sm:$0xf] }
  0x96   : > { %298 = vrot.lane.b32.xlu0 %v290_v14, %s958_s30 }
  0x97   : > { %386 = vrot.lane.b32.xlu1 %v378_v21, %s957_s29 }
  0x9a   : > { %318 = vrot.lane.b32.xlu0 %v290_v14, %s956_s28 }
  0x9b   : > { %338 = vrot.lane.b32.xlu1 %v290_v14, %s954_s26 }
  0x9e   : > { %382 = vrot.lane.b32.xlu0 %v290_v14, %s957_s29 }
  0x9f   : > { %408 = vrot.lane.b32.xlu1 %v290_v14, %s953_s25 }
  0xa2   : > { %431 = vrot.lane.b32.xlu0 %v290_v14, %s959_s6 }
  0xa3   : > { %300 = vrot.lane.b32.xlu1 %v933_v22, %s958_s30 }
  0xa6   : > { %340 = vrot.lane.b32.xlu0 %v337_v16, %s954_s26 }
  0xa7   : > { %433 = vrot.lane.b32.xlu1 %v934_v23, %s959_s6 }
  0xaa   : > { %320 = vrot.lane.b32.xlu0 %v337_v16, %s956_s28 }
  0xab   : > { %296 = vrot.lane.b32.xlu1 %v294_v24, %s958_s30 }
  0xae   : > { %384 = vrot.lane.b32.xlu0 %v337_v16, %s957_s29 }
  0xaf   : > { %410 = vrot.lane.b32.xlu1 %v337_v16, %s953_s25 }
  0xb2   : > { %364 = vrot.lane.b32.xlu0 %v290_v14, %s955_s27 }
  0xb3   : > { %366 = vrot.lane.b32.xlu1 %v337_v16, %s955_s27 }
  0xb6   : > { %449 = vrot.lane.b32.xlu0 %v337_v16, %s960_s7 }
  0xb7   : > { %429 = vrot.lane.b32.xlu1 %v294_v24, %s959_s6 }
  0xba   : > { %447 = vrot.lane.b32.xlu0 %v290_v14, %s960_s7 }
  0xbb   : > { %451 = vrot.lane.b32.xlu1 %v443_v25, %s960_s7 }
  0xbf   : > { %474 = vperm.xlu1 %930, %v230_v27  }
 0x100   : > { %v413_v28 = vpop.permute.xlu0 %412 }
 0x101   : > { %v343_v29 = vpop.permute.xlu1 %342 }
 0x104   : > { %v1068_v30 = vpop.permute.xlu0 %368 }
 0x105   : > { %v323_v31 = vpop.permute.xlu1 %322 }
 0x108   : > { %v299_v33 = vpop.permute.xlu0 %298 }
 0x109   : > { %v387_v32 = vpop.permute.xlu1 %386 }
 0x10c   : > { %v319_v35 = vpop.permute.xlu0 %318 }
 0x10d   : > { %v339_v34 = vpop.permute.xlu1 %338 }
 0x110   : > { %v383_v37 = vpop.permute.xlu0 %382 }
 0x111   : > { %v409_v36 = vpop.permute.xlu1 %408 }
 0x114   : > { %v1070_v39 = vpop.permute.xlu0 %431 }
 0x115   : > { %v301_v38 = vpop.permute.xlu1 %300 }
 0x116   : > { %v304_v40 = vsel %vm302_vm8, %v299_v33, %v301_v38  ;;  %v559_v38 = vcombine.high %v1006_v1, %v1006_v1 }
 0x117   : > { %308 = vst [vmem:[#allocation3 + $0x8] sm:$0xf0] %v304_v40 }
 0x118   : > { %v341_v42 = vpop.permute.xlu0 %340 }
 0x119   : > { %v434_v41 = vpop.permute.xlu1 %433  ;;  %v345_v44 = vsel %vm344_vm10, %v339_v34, %v341_v42  ;;  %v346_v45 = vsel %vm344_vm10, %v341_v42, %v343_v29  ;;  %v228_v34 = vld [vmem:[%s1194_s1] sm:$0xf] }
 0x11a   : > { %v437_v43 = vsel %vm435_vm9, %v1070_v39, %v434_v41  ;;  %v349_v46 = vsel %vm1027_vm6, %v345_v44, 0.0  ;;  %v350_v47 = vsel %vm1035_vm7, %v346_v45, 0.0 }
 0x11b   : > { %441 = vst [vmem:[#allocation3 + $0x38] sm:$0xf0] %v437_v43  ;;  %v353_v48 = vrot.slane %v349_v46, 4  ;;  %v354_v49 = vrot.slane %v350_v47, 4 }
 0x11c   : > { %v321_v52 = vpop.permute.xlu0 %320 }
 0x11d   : > { %v297_v53 = vpop.permute.xlu1 %296  ;;  %357 = vst [vmem:[#allocation3 + $0x10] sm:$0xf0] %v353_v48  ;;  %358 = vst [vmem:[#allocation3 + $0x18] sm:$0xf0] %v354_v49  ;;  %v325_v54 = vsel %vm324_vm11, %v319_v35, %v321_v52  ;;  %v326_v55 = vsel %vm324_vm11, %v321_v52, %v323_v31 }
 0x11e   : > { %v303_v56 = vsel %vm302_vm8, %v297_v53, %v299_v33  ;;  %v329_v57 = vsel %vm1083_vm12, %v325_v54, 0.0  ;;  %v330_v58 = vsel %vm1089_vm13, %v326_v55, 0.0  ;;  %v463_v13 = vld [vmem:[#allocation3 + $0x8] sm:$0xff] }
 0x11f   : > { %307 = vst [vmem:[#allocation3] sm:$0xf0] %v303_v56  ;;  %331 = vst [vmem:[#allocation3 + $0x10] sm:$0xf] %v329_v57 }
 0x120   : > { %332 = vst [vmem:[#allocation3 + $0x18] sm:$0xf] %v330_v58  ;;  %v385_v59 = vpop.permute.xlu0 %384 }
 0x121   : > { %v411_v60 = vpop.permute.xlu1 %410  ;;  %v389_v61 = vsel %vm388_vm14, %v383_v37, %v385_v59  ;;  %v390_v62 = vsel %vm388_vm14, %v385_v59, %v387_v32 }
 0x122   : > { %v415_v63 = vsel %vm414_vm15, %v409_v36, %v411_v60  ;;  %v416_v0 = vsel %vm414_vm15, %v411_v60, %v413_v28  ;;  %v393_v2 = vsel %vm1083_vm12, %v389_v61, 0.0  ;;  %v394_v3 = vsel %vm1089_vm13, %v390_v62, 0.0  ;;  %v231_v60 = vld [vmem:[%s1197_s4] sm:$0xff] }
 0x123   : > { %v419_v4 = vsel %vm1027_vm6, %v415_v63, 0.0  ;;  %v420_v6 = vsel %vm1035_vm7, %v416_v0, 0.0  ;;  %v397_v7 = vrot.slane %v393_v2, 4  ;;  %v398_v8 = vrot.slane %v394_v3, 4 }
 0x124   : > { %421 = vst [vmem:[#allocation3 + $0x30] sm:$0xf] %v419_v4  ;;  %422 = vst [vmem:[#allocation3 + $0x38] sm:$0xf] %v420_v6  ;;  %v365_v9 = vpop.permute.xlu0 %364  ;;  %vm477_vm6 = vcmask 293888  }
 0x125   : > { %v367_v10 = vpop.permute.xlu1 %366  ;;  %401 = vst [vmem:[#allocation3 + $0x20] sm:$0xf0] %v397_v7  ;;  %402 = vst [vmem:[#allocation3 + $0x28] sm:$0xf0] %v398_v8 }
 0x126   : > { %v371_v11 = vsel %vm370_vm0, %v365_v9, %v367_v10  ;;  %v372_v12 = vsel %vm370_vm0, %v367_v10, %v1068_v30  ;;  %v462_v14 = vld [vmem:[#allocation3] sm:$0xff]  ;;  %v464_v15 = vld [vmem:[#allocation3 + $0x10] sm:$0xff] }
 0x127   : > { %375 = vst [vmem:[#allocation3 + $0x20] sm:$0xf] %v371_v11  ;;  %376 = vst [vmem:[#allocation3 + $0x28] sm:$0xf] %v372_v12  ;;  %v465_v16 = vld [vmem:[#allocation3 + $0x18] sm:$0xff]  ;;  %v897_v18 = vpack.c.bf16 %v464_v15, %v462_v14 }
 0x128   : > { %v895_v17 = vpack.c.bf16 %v465_v16, %v463_v13  ;;  %v450_v19 = vpop.permute.xlu0 %449 }
 0x129   : > { %v430_v20 = vpop.permute.xlu1 %429 }
 0x12a   : > { %v436_v21 = vsel %vm435_vm9, %v430_v20, %v1070_v39  ;;  %896 = vmatprep.subr.bf16.mxu0 %v895_v17 }
 0x12b   : > { %440 = vst [vmem:[#allocation3 + $0x30] sm:$0xf0] %v436_v21  ;;  %898 = vmatpush1.bf16.msra.mxu0 %v897_v18  ;;  %v469_v27 = vld [vmem:[#allocation3 + $0x38] sm:$0xff] }
 0x12c   : > { %v448_v22 = vpop.permute.xlu0 %447 }
 0x12d   : > { %v452_v23 = vpop.permute.xlu1 %451  ;;  %v454_v24 = vsel %vm453_vm1, %v448_v22, %v450_v19 }
 0x12e   : > { %v455_v25 = vsel %vm453_vm1, %v450_v19, %v452_v23  ;;  %v467_v26 = vld [vmem:[#allocation3 + $0x28] sm:$0xff]  ;;  %v458_v28 = vsel %vm1083_vm12, %v454_v24, 0.0  ;;  %v466_v31 = vld [vmem:[#allocation3 + $0x20] sm:$0xff] }
 0x12f   : > { %v459_v29 = vsel %vm1089_vm13, %v455_v25, 0.0  ;;  %v899_v30 = vpack.c.bf16 %v469_v27, %v467_v26  ;;  %460 = vst [vmem:[#allocation3 + $0x40] sm:$0xf] %v458_v28 }
 0x130   : > { %461 = vst [vmem:[#allocation3 + $0x48] sm:$0xf] %v459_v29 }
 0x131   : > { %900 = vmatprep.subr.bf16.mxu0 %v899_v30 }
 0x132   : > { %v468_v32 = vld [vmem:[#allocation3 + $0x30] sm:$0xff] }
 0x133   : > { %v901_v33 = vpack.c.bf16 %v468_v32, %v466_v31 }
 0x135   : > { %902 = vmatpush1.bf16.msra.mxu0 %v901_v33 }
 0x136   : > { %v470_v36 = vld [vmem:[#allocation3 + $0x40] sm:$0xf] }
 0x137   : > { %v471_v35 = vld [vmem:[#allocation3 + $0x48] sm:$0xf] }
 0x138   : > { %885 = vmatprep.subr.msk.mxu0 %vm481_vm2, %v471_v35 }
 0x139   : > { %886 = vmatpush1.msk.msra.mxu0 %vm481_vm2, %v470_v36 }
 0x13a   : > { %887 = vmatmul.mubr.msk.f32.vlgmr.msra.gmra.mrb[0].mxu0 %vm477_vm6, %v228_v34 }
 0x13e   : > { %v475_v37 = vpop.permute.xlu1 %474 }
 0x20d   : > { %v554_v39 = vpop.f32.mrb[0].mxu0 }
 0x20e   : > { %v555_v40 = vadd.f32 %v554_v39, %v475_v37  ;;  %v556_v41 = vpop.f32.mrb[1].mxu0 }
 0x20f   : > { %v557_v42 = vadd.f32 %v556_v41, %v475_v37 }
 0x210   : > { %v561_v43 = vadd.f32 %v555_v40, %v1006_v1 }
 0x211   : > { %v562_v44 = vadd.f32 %v559_v38, %v557_v42 }
 0x212   : > { %v563_v45 = vmax.f32 %v561_v43, 0.0 }
 0x213   : > { %v564_v46 = vmax.f32 %v562_v44, 0.0 }
 0x215   : > { %v567_v47 = vcombine.low %v563_v45, %v564_v46 }
 0x217   : > { %568 = vrot.lane.b32.xlu0 %v567_v47, %s952_s24 }
 0x289   : > { %v569_v48 = vpop.permute.xlu0 %568 }
 0x28a   : > { %v570_v49 = vrot.slane %v569_v48, 4 }
 0x28c   : > { %v571_v50 = vsel %vm268_vm3, %v570_v49, %v569_v48  ;;  %575 = vst.msk [vmem:[#allocation2 + $0x8] sm:$0xf] %vm276_vm4, %v570_v49 }
 0x28d   : > { %574 = vst.msk [vmem:[#allocation2] sm:$0xff] %vm1012_vm5, %v571_v50 }
 0x293   : > { %v636_v51 = vld [vmem:[#allocation2 + $0x8] sm:$0xf] }
 0x294   : > { %v601_v52 = vld [vmem:[#allocation2 + $0x8] sm:$0xf]  ;;  %644 = vrot.lane.b32.xlu1 %v636_v51, %s955_s27  ;;  %v600_v1 = vld [vmem:[#allocation2] sm:$0xff] }
 0x295   : > { %609 = vrot.lane.b32.xlu0 %v601_v52, %s956_s28  ;;  %v604_v53 = vcombine.high %v600_v1, %v600_v1  ;;  %580 = vst [vmem:[#allocation3] sm:$0xf] %v600_v1  ;;  %v671_v54 = vld [vmem:[#allocation2 + $0x8] sm:$0xf]  ;;  %v656_v57 = vcombine.low %v600_v1, %v600_v1  ;;  %v229_v52 = vld [vmem:[%s1196_s3] sm:$0xff] }
 0x296   : > { %v939_v5 = vld [vmem:[#allocation2 + $0x8] ss:$0 sps:$4 sm:$0xff]  }
 0x297   : > { %581 = vst [vmem:[#allocation3 + $0x8] sm:$0xf] %v604_v53  ;;  %v940_v55 = vld [vmem:[#allocation2 + $0x8] ss:$0 sps:$4 sm:$0xff]  }
 0x298   : > { %679 = vrot.lane.b32.xlu1 %v671_v54, %s953_s25  ;;  %v941_v56 = vld [vmem:[#allocation2 + $0x8] ss:$0 sps:$4 sm:$0xff]  }
 0x299   : > { %605 = vrot.lane.b32.xlu0 %v600_v1, %s956_s28  ;;  %v942_v58 = vld [vmem:[#allocation2 + $0x8] ss:$0 sps:$4 sm:$0xff]  }
 0x29a   : > { %v706_v59 = vld [vmem:[#allocation2 + $0x8] sm:$0xf] }
 0x29c   : > { %590 = vrot.lane.b32.xlu1 %v600_v1, %s958_s30 }
 0x29d   : > { %660 = vrot.lane.b32.xlu0 %v600_v1, %s957_s29 }
 0x2a0   : > { %625 = vrot.lane.b32.xlu1 %v600_v1, %s954_s26 }
 0x2a1   : > { %695 = vrot.lane.b32.xlu0 %v600_v1, %s959_s6 }
 0x2a4   : > { %662 = vrot.lane.b32.xlu1 %v939_v5, %s957_s29 }
 0x2a5   : > { %640 = vrot.lane.b32.xlu0 %v600_v1, %s955_s27 }
 0x2a8   : > { %697 = vrot.lane.b32.xlu1 %v940_v55, %s959_s6 }
 0x2a9   : > { %675 = vrot.lane.b32.xlu0 %v600_v1, %s953_s25 }
 0x2ac   : > { %607 = vrot.lane.b32.xlu1 %v604_v53, %s956_s28 }
 0x2ad   : > { %592 = vrot.lane.b32.xlu0 %v941_v56, %s958_s30 }
 0x2b0   : > { %588 = vrot.lane.b32.xlu1 %v656_v57, %s958_s30 }
 0x2b1   : > { %627 = vrot.lane.b32.xlu0 %v942_v58, %s954_s26 }
 0x2b4   : > { %623 = vrot.lane.b32.xlu1 %v656_v57, %s954_s26 }
 0x2b5   : > { %642 = vrot.lane.b32.xlu0 %v604_v53, %s955_s27 }
 0x2b8   : > { %658 = vrot.lane.b32.xlu1 %v656_v57, %s957_s29 }
 0x2b9   : > { %677 = vrot.lane.b32.xlu0 %v604_v53, %s953_s25 }
 0x2bc   : > { %693 = vrot.lane.b32.xlu1 %v656_v57, %s959_s6 }
 0x2bd   : > { %712 = vrot.lane.b32.xlu0 %v604_v53, %s960_s7 }
 0x2c0   : > { %714 = vrot.lane.b32.xlu1 %v706_v59, %s960_s7 }
 0x2c1   : > { %710 = vrot.lane.b32.xlu0 %v600_v1, %s960_s7 }
 0x2c4   : > { %734 = vperm.xlu1 %930, %v231_v60  }
 0x306   : > { %v645_v61 = vpop.permute.xlu1 %644 }
 0x307   : > { %v610_v62 = vpop.permute.xlu0 %609 }
 0x30a   : > { %v680_v63 = vpop.permute.xlu1 %679 }
 0x30b   : > { %v606_v0 = vpop.permute.xlu0 %605 }
 0x30e   : > { %v591_v3 = vpop.permute.xlu1 %590 }
 0x30f   : > { %v661_v2 = vpop.permute.xlu0 %660 }
 0x312   : > { %v626_v6 = vpop.permute.xlu1 %625 }
 0x313   : > { %v696_v4 = vpop.permute.xlu0 %695 }
 0x316   : > { %v663_v8 = vpop.permute.xlu1 %662 }
 0x317   : > { %v641_v7 = vpop.permute.xlu0 %640  ;;  %v665_v9 = vsel %vm388_vm14, %v661_v2, %v663_v8 }
 0x318   : > { %669 = vst [vmem:[#allocation3 + $0x28] sm:$0xf0] %v665_v9 }
 0x31a   : > { %v698_v11 = vpop.permute.xlu1 %697 }
 0x31b   : > { %v676_v10 = vpop.permute.xlu0 %675  ;;  %v700_v12 = vsel %vm435_vm9, %v696_v4, %v698_v11 }
 0x31c   : > { %704 = vst [vmem:[#allocation3 + $0x38] sm:$0xf0] %v700_v12 }
 0x31e   : > { %v608_v13 = vpop.permute.xlu1 %607 }
 0x31f   : > { %v593_v14 = vpop.permute.xlu0 %592  ;;  %v611_v15 = vsel %vm324_vm11, %v606_v0, %v608_v13  ;;  %v612_v17 = vsel %vm324_vm11, %v608_v13, %v610_v62 }
 0x320   : > { %v595_v16 = vsel %vm302_vm8, %v591_v3, %v593_v14  ;;  %615 = vst [vmem:[#allocation3 + $0x10] sm:$0xf] %v611_v15  ;;  %616 = vst [vmem:[#allocation3 + $0x18] sm:$0xf] %v612_v17 }
 0x321   : > { %599 = vst [vmem:[#allocation3 + $0x8] sm:$0xf0] %v595_v16 }
 0x322   : > { %v589_v19 = vpop.permute.xlu1 %588 }
 0x323   : > { %v628_v18 = vpop.permute.xlu0 %627  ;;  %v594_v21 = vsel %vm302_vm8, %v589_v19, %v591_v3 }
 0x324   : > { %v630_v20 = vsel %vm344_vm10, %v626_v6, %v628_v18  ;;  %598 = vst [vmem:[#allocation3] sm:$0xf0] %v594_v21 }
 0x325   : > { %634 = vst [vmem:[#allocation3 + $0x18] sm:$0xf0] %v630_v20 }
 0x326   : > { %v624_v23 = vpop.permute.xlu1 %623 }
 0x327   : > { %v643_v22 = vpop.permute.xlu0 %642  ;;  %v629_v26 = vsel %vm344_vm10, %v624_v23, %v626_v6 }
 0x328   : > { %v646_v24 = vsel %vm370_vm0, %v641_v7, %v643_v22  ;;  %v647_v25 = vsel %vm370_vm0, %v643_v22, %v645_v61  ;;  %633 = vst [vmem:[#allocation3 + $0x10] sm:$0xf0] %v629_v26  ;;  %v723_v32 = vld [vmem:[#allocation3 + $0x8] sm:$0xff] }
 0x329   : > { %650 = vst [vmem:[#allocation3 + $0x20] sm:$0xf] %v646_v24  ;;  %651 = vst [vmem:[#allocation3 + $0x28] sm:$0xf] %v647_v25 }
 0x32a   : > { %v659_v28 = vpop.permute.xlu1 %658 }
 0x32b   : > { %v678_v27 = vpop.permute.xlu0 %677  ;;  %v664_v31 = vsel %vm388_vm14, %v659_v28, %v661_v2  ;;  %v722_v38 = vld [vmem:[#allocation3] sm:$0xff] }
 0x32c   : > { %v681_v29 = vsel %vm414_vm15, %v676_v10, %v678_v27  ;;  %v682_v30 = vsel %vm414_vm15, %v678_v27, %v680_v63  ;;  %v725_v33 = vld [vmem:[#allocation3 + $0x18] sm:$0xff]  ;;  %668 = vst [vmem:[#allocation3 + $0x20] sm:$0xf0] %v664_v31 }
 0x32d   : > { %685 = vst [vmem:[#allocation3 + $0x30] sm:$0xf] %v681_v29  ;;  %686 = vst [vmem:[#allocation3 + $0x38] sm:$0xf] %v682_v30  ;;  %v903_v34 = vpack.c.bf16 %v725_v33, %v723_v32 }
 0x32e   : > { %v694_v36 = vpop.permute.xlu1 %693 }
 0x32f   : > { %v713_v35 = vpop.permute.xlu0 %712  ;;  %904 = vmatprep.subr.bf16.mxu1 %v903_v34  ;;  %v699_v37 = vsel %vm435_vm9, %v694_v36, %v696_v4  ;;  %v724_v39 = vld [vmem:[#allocation3 + $0x10] sm:$0xff] }
 0x330   : > { %703 = vst [vmem:[#allocation3 + $0x30] sm:$0xf0] %v699_v37  ;;  %v905_v40 = vpack.c.bf16 %v724_v39, %v722_v38  ;;  %v727_v45 = vld [vmem:[#allocation3 + $0x28] sm:$0xff] }
 0x332   : > { %v715_v42 = vpop.permute.xlu1 %714  ;;  %906 = vmatpush1.bf16.msra.mxu1 %v905_v40 }
 0x333   : > { %v711_v41 = vpop.permute.xlu0 %710  ;;  %v717_v44 = vsel %vm453_vm1, %v713_v35, %v715_v42  ;;  %v726_v48 = vld [vmem:[#allocation3 + $0x20] sm:$0xff] }
 0x334   : > { %v716_v43 = vsel %vm453_vm1, %v711_v41, %v713_v35  ;;  %v729_v46 = vld [vmem:[#allocation3 + $0x38] sm:$0xff]  ;;  %721 = vst [vmem:[#allocation3 + $0x48] sm:$0xf] %v717_v44 }
 0x335   : > { %720 = vst [vmem:[#allocation3 + $0x40] sm:$0xf] %v716_v43  ;;  %v907_v47 = vpack.c.bf16 %v729_v46, %v727_v45 }
 0x337   : > { %908 = vmatprep.subr.bf16.mxu1 %v907_v47  ;;  %v728_v49 = vld [vmem:[#allocation3 + $0x30] sm:$0xff] }
 0x338   : > { %v909_v50 = vpack.c.bf16 %v728_v49, %v726_v48 }
 0x33a   : > { %910 = vmatpush1.bf16.msra.mxu1 %v909_v50 }
 0x33b   : > { %v731_v51 = vld [vmem:[#allocation3 + $0x48] sm:$0xf] }
 0x33c   : > { %888 = vmatprep.subr.msk.mxu1 %vm481_vm2, %v731_v51  ;;  %v730_v1 = vld [vmem:[#allocation3 + $0x40] sm:$0xf] }
 0x33e   : > { %889 = vmatpush1.msk.msra.mxu1 %vm481_vm2, %v730_v1 }
 0x33f   : > { %890 = vmatmul.mubr.msk.f32.vlgmr.msra.gmra.mrb[0].mxu1 %vm477_vm6, %v229_v52 }
 0x343   : > { %v735_v53 = vpop.permute.xlu1 %734 }
 0x412   : > { %v812_v54 = vpop.f32.mrb[0].mxu1 }
 0x413   : > { %v813_v5 = vadd.f32 %v812_v54, %v735_v53  ;;  %v814_v55 = vpop.f32.mrb[1].mxu1 }
 0x414   : > { %v815_v56 = vadd.f32 %v814_v55, %v735_v53 }
 0x415   : > { %v817_v57 = vmax.f32 %v813_v5, 0.0 }
 0x416   : > { %v818_v58 = vmax.f32 %v815_v56, 0.0 }
 0x417   : > { %819 = vst [vmem:[%s224_s21] sm:$0xff] %v817_v57 }
 0x418   : > { %820 = vst [vmem:[%s224_s21 + $0x8] sm:$0xff] %v818_v58 }
 0x419 PF: > { %s15_s18 = sadd.s32 1, %s949_s18  }
 0x41a   : > { %p12_p4 = scmp.ge.s32.totalorder %s15_s18, 4  }
 0x41c   :  { %14 = sbr.rel (!%p12_p4) target bundleno = 1 (0x1), region = 70 }

</bundles_post_ra>
